<compile_context>
chip_gen: v7x
topology: tpu7x:2x2x1
jax: 0.10.0
libtpu: 0.0.40
codegen_flags: <defaults>
</compile_context>

<pallas_src>
import functools

import jax
import jax.numpy as jnp
from jax.experimental import pallas as pl
from jax.experimental.pallas import tpu as pltpu


def _round_up(a, b):
    return (a + b - 1) // b * b


def _cdiv(a, b):
    return (a + b - 1) // b


def _device_kind():
    try:
        return jax.devices()[0].device_kind.lower()
    except Exception:
        return ""


def _chip_defaults(kind):
    """Returns ((tm, tn, tk), vmem_limit_cap_bytes, n_tensorcores_per_chip)."""
    if "v7" in kind:
        # 64 MiB VMEM / TC, 3.2 TB/s HBM: moderate tiles already saturate the MXU.
        return (512, 512, 1024), 40 << 20, 2
    if "v6" in kind:
        # ~680 FLOP/byte crossover: needs big M/N tiles to be compute bound.
        return (1024, 1024, 512), 96 << 20, 1
    if "v5p" in kind or "v4" in kind:
        return (512, 512, 512), 96 << 20, 2
    if "v5" in kind:  # v5e / v5 lite
        return (512, 512, 512), 96 << 20, 1
    return (512, 512, 512), 64 << 20, 1


def _maybe_buffered_spec(shape, index_map, buffers):
    """BlockSpec with optional >2-deep pipelining; falls back if unsupported."""
    buffered = getattr(pl, "Buffered", None)
    if buffers and buffers > 2 and buffered is not None:
        try:
            return pl.BlockSpec(shape, index_map, pipeline_mode=buffered(buffers))
        except TypeError:
            pass
    return pl.BlockSpec(shape, index_map)


def _fp8_linear_kernel(*refs, has_bias, acc_in_out, native_fp8):
    if acc_in_out:
        if has_bias:
            x_ref, w_ref, ws_ref, b_ref, o_ref = refs
        else:
            x_ref, w_ref, ws_ref, o_ref = refs
            b_ref = None
        acc_ref = o_ref                        # f32 output doubles as the accumulator
    else:
        if has_bias:
            x_ref, w_ref, ws_ref, b_ref, o_ref, acc_ref = refs
        else:
            x_ref, w_ref, ws_ref, o_ref, acc_ref = refs
            b_ref = None

    k = pl.program_id(2)

    @pl.when(k == 0)
    def _():
        acc_ref[...] = jnp.zeros_like(acc_ref)

    # bf16 x bf16 -> f32 accumulate on the MXU.  fp8 -> bf16 is an exact cast.
    x = x_ref[...].astype(jnp.bfloat16)        # no-op when glue already pre-cast
    w = w_ref[...]
    if not native_fp8:
        w = w.astype(jnp.bfloat16)
    acc_ref[...] += jnp.dot(x, w, preferred_element_type=jnp.float32)

    @pl.when(k == pl.num_programs(2) - 1)
    def _():
        # Output-side per-channel scaling (exact: the per-row scale distributes over
        # the K-sum), lane-dense (1, tn) operand.
        out = acc_ref[...] * ws_ref[...]
        if has_bias:
            out = out + b_ref[...]
        o_ref[...] = out.astype(o_ref.dtype)


def fp8_dequant_linear(x, weight_fp8, weight_scale, bias=None, *,
                       tm=None, tn=None, tk=None,
                       out_dtype=jnp.float32,
                       weight_layout="nk",
                       native_fp8=False,
                       weight_buffers=None):
    """Pallas implementation of FP8DeQuantLinear.forward.

    x             : (..., K) float activations.
    weight_fp8    : (N, K) float8_e4m3fn  (weight_layout="nk", default), or
                    (K, N) float8_e4m3fn  (weight_layout="kn", pre-transposed at load).
    weight_scale  : scalar, (1,), or (N, 1) float32 ('tensor' or 'channel').
    bias          : optional (N,) (any float dtype) or None.
    out_dtype     : float32 by default (matches torch); bfloat16 halves output traffic.
    native_fp8    : feed fp8 weights directly to the MXU (v7x); opt-in.
    returns       : (..., N) out_dtype.
    """
    kind = _device_kind()
    (dtm, dtn, dtk), vmem_cap, n_cores = _chip_defaults(kind)
    tm = dtm if tm is None else tm
    tn = dtn if tn is None else tn
    tk = dtk if tk is None else tk

    *lead, K = x.shape
    if weight_layout == "nk":
        N, Kw = weight_fp8.shape
        # TODO(synk): for real models store the weight pre-transposed ("kn") at load
        # time so this relayout is not paid on every forward call.
        wt = weight_fp8.T                                  # (K, N), stays fp8 in HBM
    elif weight_layout == "kn":
        Kw, N = weight_fp8.shape
        wt = weight_fp8
    else:
        raise ValueError(f"unknown weight_layout {weight_layout!r}")
    assert K == Kw, (K, Kw)

    M = 1
    for d in lead:
        M *= int(d)
    M = max(M, 1)

    # ---- tile selection: clamp to the (padded) problem, keep MXU-friendly alignment ----
    tm = min(tm, _round_up(M, 16))       # 16 = bf16 sublane pack
    tn = min(tn, _round_up(N, 128))
    tk = min(tk, _round_up(K, 128))
    Mp = _round_up(M, tm)
    # Megacore / v7x: make sure at least 2 parallel blocks exist when M gives only one.
    if n_cores >= 2 and Mp // tm == 1 and N > 128:
        tn = min(tn, max(128, _round_up(_cdiv(N, 2), 128)))
    Np = _round_up(N, tn)
    Kp = _round_up(K, tk)
    nk_steps = Kp // tk
    nj_blocks = Np // tn

    # ---- glue ----
    x2d = x.reshape(M, K)
    if x2d.dtype != jnp.bfloat16 and (nj_blocks > 2 or x2d.dtype == jnp.float16):
        # Pre-casting x to bf16 in glue only pays off when x is re-streamed for many
        # N tiles; f16 is always pre-cast (the MXU path is bf16).
        x2d = x2d.astype(jnp.bfloat16)

    ws = jnp.broadcast_to(
        jnp.asarray(weight_scale, jnp.float32).reshape(-1), (N,)
    ).reshape(1, N)                                        # lane-dense per-channel scale

    # Zero-padding K is exact for the matmul; edge M/N tiles are sliced off at the end.
    if (Mp, Kp) != (M, K):
        x2d = jnp.pad(x2d, ((0, Mp - M), (0, Kp - K)))
    if (Kp, Np) != (K, N):
        wt = jnp.pad(wt, ((0, Kp - K), (0, Np - N)))
    if Np != N:
        ws = jnp.pad(ws, ((0, 0), (0, Np - N)))

    has_bias = bias is not None
    if weight_buffers is None:
        weight_buffers = 3 if (nk_steps >= 3 and "v7" not in kind) else 2

    args = [x2d, wt, ws]
    in_specs = [
        pl.BlockSpec((tm, tk), lambda i, j, k: (i, k)),            # activations
        _maybe_buffered_spec((tk, tn), lambda i, j, k: (k, j),
                             weight_buffers),                      # fp8 weights (K, N)
        pl.BlockSpec((1, tn), lambda i, j, k: (0, j)),             # per-channel scale
    ]
    if has_bias:
        b2d = jnp.asarray(bias, jnp.float32).reshape(1, N)
        if Np != N:
            b2d = jnp.pad(b2d, ((0, 0), (0, Np - N)))
        args.append(b2d)
        in_specs.append(pl.BlockSpec((1, tn), lambda i, j, k: (0, j)))

    # f32 output -> accumulate directly into the resident output block (no scratch).
    acc_in_out = jnp.dtype(out_dtype) == jnp.dtype(jnp.float32)
    scratch_shapes = [] if acc_in_out else [pltpu.VMEM((tm, tn), jnp.float32)]

    # ---- VMEM limit sized to the actual working set (+headroom), capped per chip ----
    x_bytes = tm * tk * x2d.dtype.itemsize
    w_bytes = tk * tn * 1
    o_bytes = tm * tn * jnp.dtype(out_dtype).itemsize
    working = 2 * (x_bytes + o_bytes) + max(weight_buffers, 2) * w_bytes
    working += 0 if acc_in_out else tm * tn * 4
    working += 4 * tn * 4                                   # scale/bias rows
    vmem_limit = min(max(int(working * 3 // 2) + (2 << 20), 16 << 20), vmem_cap)

    grid = (Mp // tm, Np // tn, nk_steps)

    out = pl.pallas_call(
        functools.partial(_fp8_linear_kernel, has_bias=has_bias,
                          acc_in_out=acc_in_out, native_fp8=native_fp8),
        out_shape=jax.ShapeDtypeStruct((Mp, Np), out_dtype),
        grid_spec=pltpu.PrefetchScalarGridSpec(
            num_scalar_prefetch=0,
            grid=grid,
            in_specs=in_specs,
            out_specs=pl.BlockSpec((tm, tn), lambda i, j, k: (i, j)),
            scratch_shapes=scratch_shapes,
        ),
        compiler_params=pltpu.CompilerParams(
            dimension_semantics=("parallel", "parallel", "arbitrary"),
            vmem_limit_bytes=vmem_limit,
        ),
    )(*args)

    out = out[:M, :N]
    return out.reshape(*lead, N)


if __name__ == "__main__":
    # Small shapes consistent with the module: a linear layer on (batch, seq, in_features).
    batch, seq = 2, 16
    in_features, out_features = 384, 256

    key = jax.random.PRNGKey(0)
    kx, kw, ks, kb = jax.random.split(key, 4)

    # Deterministic synthetic "checkpoint": fp8 weights, per-channel fp32 scales, fp16 bias.
    x = jax.random.normal(kx, (batch, seq, in_features), dtype=jnp.float32).astype(jnp.float16)
    weight_fp8 = jax.random.normal(kw, (out_features, in_features), dtype=jnp.float32).astype(
        jnp.float8_e4m3fn
    )
    weight_scale = jax.random.uniform(
        ks, (out_features, 1), dtype=jnp.float32, minval=0.01, maxval=0.05
    )
    bias = jax.random.normal(kb, (out_features,), dtype=jnp.float32).astype(jnp.float16)

    # Plain-JAX reference of the exact PyTorch forward semantics.
    w_deq = weight_fp8.astype(jnp.float32) * weight_scale
    ref = (
        jnp.einsum("bsk,nk->bsn", x.astype(jnp.float32), w_deq)
        + bias.astype(jnp.float32)[None, None, :]
    )
    ref_nb = jnp.einsum("bsk,nk->bsn", x.astype(jnp.float32), w_deq)

    # 1) Chip-aware default tiles, bias, f32 output (output-as-accumulator path).
    out = fp8_dequant_linear(x, weight_fp8, weight_scale, bias)
    out = jax.block_until_ready(out)

    # 2) Explicit small tiles: multi-step (M, N, K) grid exercising the k==0 init /
    #    k==last finalize, the no-bias path, and (on v5e/v6e) Buffered(3) weight streaming.
    out_nb = fp8_dequant_linear(x, weight_fp8, weight_scale, None, tm=32, tn=128, tk=128)
    out_nb = jax.block_until_ready(out_nb)

    # 3) bf16 output (scratch-accumulator path) + pre-transposed (K, N) weight layout,
    #    i.e. the weight-prep hoisted out of the per-call path.
    out_bf16 = fp8_dequant_linear(x, weight_fp8.T, weight_scale, bias,
                                  weight_layout="kn", out_dtype=jnp.bfloat16)
    out_bf16 = jax.block_until_ready(out_bf16)

    assert out.shape == (batch, seq, out_features) and out.dtype == jnp.float32
    assert out_nb.shape == (batch, seq, out_features) and out_nb.dtype == jnp.float32
    assert out_bf16.shape == (batch, seq, out_features) and out_bf16.dtype == jnp.bfloat16

    # bf16 MXU path: relaxed tolerance vs the f32 torch reference.
    err = float(jnp.max(jnp.abs(out - ref)))
    err_nb = float(jnp.max(jnp.abs(out_nb - ref_nb)))
    err_bf = float(jnp.max(jnp.abs(out_bf16.astype(jnp.float32) - ref)))
    assert jnp.allclose(out, ref, atol=5e-2, rtol=5e-2), err
    assert jnp.allclose(out_nb, ref_nb, atol=5e-2, rtol=5e-2), err_nb
    assert jnp.allclose(out_bf16.astype(jnp.float32), ref, atol=1e-1, rtol=5e-2), err_bf

    print("KERNEL_OK")
</pallas_src>

<mosaic_0001>
module attributes {stable_mosaic.version = 11 : i64} {
  func.func @_fp8_linear_kernel(%arg0: i32, %arg1: i32, %arg2: i32, %arg3: memref<32x384xbf16, #tpu.memory_space<vmem>>, %arg4: memref<384x256xf8E4M3FN, #tpu.memory_space<vmem>>, %arg5: memref<1x256xf32, #tpu.memory_space<vmem>>, %arg6: memref<1x256xf32, #tpu.memory_space<vmem>>, %arg7: memref<32x256xf32, #tpu.memory_space<vmem>>) attributes {dimension_semantics = [#tpu.dimension_semantics<parallel>, #tpu.dimension_semantics<parallel>, #tpu.dimension_semantics<arbitrary>], iteration_bounds = array<i64: 1, 1, 1>, scalar_prefetch = 0 : i64, scratch_operands = 0 : i64, tpu.core_type = #tpu.core_type<tc>, window_params = [{transform_indices = @transform_0, window_bounds = array<i64: 32, 384>}, {transform_indices = @transform_1, window_bounds = array<i64: 384, 256>}, {transform_indices = @transform_2, window_bounds = array<i64: 1, 256>}, {transform_indices = @transform_3, window_bounds = array<i64: 1, 256>}, {transform_indices = @transform_4, window_bounds = array<i64: 32, 256>}]} {
    %c0_i32 = arith.constant 0 : i32
    %0 = arith.cmpi eq, %arg2, %c0_i32 : i32
    %1 = arith.extui %0 : i1 to i32
    %c0_i32_0 = arith.constant 0 : i32
    %2 = arith.cmpi ne, %1, %c0_i32_0 : i32
    scf.if %2 {
      %cst_10 = arith.constant 0.000000e+00 : f32
      %13 = vector.broadcast %cst_10 : f32 to vector<32x256xf32>
      %c0_11 = arith.constant 0 : index
      %c0_12 = arith.constant 0 : index
      %14 = vector.load %arg7[%c0_11, %c0_12] : memref<32x256xf32, #tpu.memory_space<vmem>>, vector<32x256xf32>
      tpu.vector_store %arg7[%c0_11, %c0_12], %13 {strides = array<i32>} : memref<32x256xf32, #tpu.memory_space<vmem>>, vector<32x256xf32>,
    } else {
    }
    %c0 = arith.constant 0 : index
    %c0_1 = arith.constant 0 : index
    %3 = vector.load %arg3[%c0, %c0_1] : memref<32x384xbf16, #tpu.memory_space<vmem>>, vector<32x384xbf16>
    %c0_2 = arith.constant 0 : index
    %c0_3 = arith.constant 0 : index
    %4 = vector.load %arg4[%c0_2, %c0_3] : memref<384x256xf8E4M3FN, #tpu.memory_space<vmem>>, vector<384x256xf8E4M3FN>
    %5 = arith.extf %4 : vector<384x256xf8E4M3FN> to vector<384x256xbf16>
    %c0_4 = arith.constant 0 : index
    %c0_5 = arith.constant 0 : index
    %6 = vector.load %arg7[%c0_4, %c0_5] : memref<32x256xf32, #tpu.memory_space<vmem>>, vector<32x256xf32>
    %cst = arith.constant dense<0.000000e+00> : vector<32x256xf32>
    %7 = tpu.matmul %3, %5, %cst {dimension_numbers = #tpu.dot_dimension_numbers<[1], [0], [0], [1], [0, 0, 1, 1], [], []>} : vector<32x384xbf16>, vector<384x256xbf16>, vector<32x256xf32> -> vector<32x256xf32>
    %8 = arith.addf %6, %7 : vector<32x256xf32>
    %c0_6 = arith.constant 0 : index
    %c0_7 = arith.constant 0 : index
    %9 = vector.load %arg7[%c0_6, %c0_7] : memref<32x256xf32, #tpu.memory_space<vmem>>, vector<32x256xf32>
    tpu.vector_store %arg7[%c0_6, %c0_7], %8 {strides = array<i32>} : memref<32x256xf32, #tpu.memory_space<vmem>>, vector<32x256xf32>,
    %c0_i32_8 = arith.constant 0 : i32
    %10 = arith.cmpi eq, %arg2, %c0_i32_8 : i32
    %11 = arith.extui %10 : i1 to i32
    %c0_i32_9 = arith.constant 0 : i32
    %12 = arith.cmpi ne, %11, %c0_i32_9 : i32
    scf.if %12 {
      %c0_10 = arith.constant 0 : index
      %c0_11 = arith.constant 0 : index
      %13 = vector.load %arg7[%c0_10, %c0_11] : memref<32x256xf32, #tpu.memory_space<vmem>>, vector<32x256xf32>
      %c0_12 = arith.constant 0 : index
      %c0_13 = arith.constant 0 : index
      %14 = vector.load %arg5[%c0_12, %c0_13] : memref<1x256xf32, #tpu.memory_space<vmem>>, vector<1x256xf32>
      %15 = vector.broadcast %14 : vector<1x256xf32> to vector<32x256xf32>
      %16 = arith.mulf %13, %15 : vector<32x256xf32>
      %c0_14 = arith.constant 0 : index
      %c0_15 = arith.constant 0 : index
      %17 = vector.load %arg6[%c0_14, %c0_15] : memref<1x256xf32, #tpu.memory_space<vmem>>, vector<1x256xf32>
      %18 = vector.broadcast %17 : vector<1x256xf32> to vector<32x256xf32>
      %19 = arith.addf %16, %18 : vector<32x256xf32>
      %c0_16 = arith.constant 0 : index
      %c0_17 = arith.constant 0 : index
      %20 = vector.load %arg7[%c0_16, %c0_17] : memref<32x256xf32, #tpu.memory_space<vmem>>, vector<32x256xf32>
      tpu.vector_store %arg7[%c0_16, %c0_17], %19 {strides = array<i32>} : memref<32x256xf32, #tpu.memory_space<vmem>>, vector<32x256xf32>,
    } else {
    }
    return
  }
  func.func @transform_0(%arg0: i32, %arg1: i32, %arg2: i32) -> (i32, i32) {
    %c0_i32 = arith.constant 0 : i32
    return %arg0, %arg2 : i32, i32
  }
  func.func @transform_1(%arg0: i32, %arg1: i32, %arg2: i32) -> (i32, i32) {
    %c0_i32 = arith.constant 0 : i32
    return %arg2, %arg1 : i32, i32
  }
  func.func @transform_2(%arg0: i32, %arg1: i32, %arg2: i32) -> (i32, i32) {
    %c0_i32 = arith.constant 0 : i32
    %c0_i32_0 = arith.constant 0 : i32
    return %c0_i32, %arg1 : i32, i32
  }
  func.func @transform_3(%arg0: i32, %arg1: i32, %arg2: i32) -> (i32, i32) {
    %c0_i32 = arith.constant 0 : i32
    %c0_i32_0 = arith.constant 0 : i32
    return %c0_i32, %arg1 : i32, i32
  }
  func.func @transform_4(%arg0: i32, %arg1: i32, %arg2: i32) -> (i32, i32) {
    %c0_i32 = arith.constant 0 : i32
    return %arg0, %arg1 : i32, i32
  }
}

</mosaic_0001>

<bundles_post_ra>
// kernel: tpu_custom_call.1
= control target key start
LH: loop header
LB: loop body
LE: loop exit
PB: predicated region body
PF: predicated region fallthrough
CT: control target
= control target key end

     0   :  { %9 = vsyncpa [#allocation3], 0  ;;  %s564_s0 = inlined_call_operand.hbm [shape: bf16[32,384], index: 0, kind: input, shape index: {}]   ;;  %s565_s1 = inlined_call_operand.hbm [shape: f8e4m3fn[384,256], index: 1, kind: input, shape index: {}]   ;;  %s566_s2 = inlined_call_operand.vmem [shape: f32[1,256], index: 2, kind: input, shape index: {}]   ;;  %s567_s3 = inlined_call_operand.vmem [shape: f32[1,256], index: 3, kind: input, shape index: {}]   ;;  %s568_s4 = inlined_call_operand.hbm [shape: f32[32,256], index: 4, kind: output, shape index: {}]  }
   0x1   :  { %10 = vsyncpa [#allocation6], 0 }
   0x2   :  { %11 = vsyncpa [#allocation4], 0  ;;  %s481_s15 = smov [#allocation2]   ;;  %s409_s19 = scalar_lea.hbm %s564_s0, 768 }
   0x3   :  { %s17_s16 = sshll.u32 %s481_s15, 4  ;;  %p410_p0 = scmp.ne.s32.totalorder %s564_s0, %s409_s19  ;;  %s18_s16 = int_to_ptr.vmem [resolvable:$true] %s17_s16 }
   0x4   :  { %p413_p1 = scmp.lt.u32.totalorder %s409_s19, %s564_s0 }
   0x6   :  { %p415_p2 = pnand %p413_p1, %p410_p0 }
   0x8   :  { %418 = shalt.err (!%p415_p2)
}
   0x9   :  { %s419_s24 = scalar_lea.vmem %s18_s16, 768  ;;  %p424_p4 = scmp.lt.s32.totalorder %s18_s16, %s18_s16 }
   0xa   :  { %p420_p3 = scmp.ne.s32.totalorder %s18_s16, %s419_s24  ;;  %p425_p5 = scmp.lt.s32.totalorder %s419_s24, %s419_s24 }
   0xc   :  { %p426_p6 = por %p425_p5, %p424_p4 }
   0xe   :  { %p427_p7 = pnand %p426_p6, %p420_p3 }
  0x10   :  { %430 = shalt.err (!%p427_p7)
}
  0x11   :  { %s482_s25 = smov 192   ;;  %s483_s26 = smov 12  }
  0x12   :  { %23 = dma.hbm_to_vmem [thread:$0]  %s564_s0, 768, %s18_s16, [#allocation3], %s482_s25, %s482_s25, %s483_s26  }
  0x13   :  { %s484_s29 = smov [#allocation5]   ;;  %s431_s7 = scalar_lea.hbm %s565_s1, 3072 }
  0x14   :  { %s29_s30 = sshll.u32 %s484_s29, 4  ;;  %p432_p8 = scmp.ne.s32.totalorder %s565_s1, %s431_s7  ;;  %s30_s30 = int_to_ptr.vmem [resolvable:$true] %s29_s30 }
  0x15   :  { %p435_p9 = scmp.lt.u32.totalorder %s431_s7, %s565_s1 }
  0x17   :  { %p437_p10 = pnand %p435_p9, %p432_p8 }
  0x19   :  { %440 = shalt.err (!%p437_p10)
}
  0x1a   :  { %s441_s12 = scalar_lea.vmem %s30_s30, 3072  ;;  %p446_p12 = scmp.lt.s32.totalorder %s30_s30, %s30_s30 }
  0x1b   :  { %p442_p11 = scmp.ne.s32.totalorder %s30_s30, %s441_s12  ;;  %p447_p13 = scmp.lt.s32.totalorder %s441_s12, %s441_s12 }
  0x1d   :  { %p448_p0 = por %p447_p13, %p446_p12 }
  0x1f   :  { %p449_p1 = pnand %p448_p0, %p442_p11 }
  0x21   :  { %452 = shalt.err (!%p449_p1)
}
  0x22   :  { %s485_s0 = smov 256   ;;  %s486_s13 = smov 16  }
  0x23   :  { %35 = dma.hbm_to_vmem [thread:$0]  %s565_s1, 3072, %s30_s30, [#allocation6], %s485_s0, %s485_s0, %s486_s13  }
  0x24   :  { %475 = dma.done.wait [#allocation3], 768  }
  0x25   :  { %476 = vsyncadd [#allocation3], 4294966528 }
  0x26   :  { %477 = dma.done.wait [#allocation6], 3072  }
  0x27   :  { %478 = vsyncadd [#allocation6], 4294964224  ;;  %v487_v0 = vmov 0   ;;  %v68_v1 = vld [vmem:[#allocation5 + $0x8] sm:$0xff]  ;;  %v67_v2 = vld [vmem:[#allocation5] sm:$0xff] }
  0x28   :  { %264 = vmatprep.mubr.bf16.mxu0 %v487_v0  ;;  %v92_v3 = vunpack.c.l.f8e4m3fn %v68_v1  ;;  %v94_v4 = vunpack.c.h.f8e4m3fn %v68_v1  ;;  %v91_v5 = vunpack.c.l.f8e4m3fn %v67_v2  ;;  %v70_v6 = vld [vmem:[#allocation5 + $0x18] sm:$0xff]  ;;  %v84_v7 = vld [vmem:[#allocation5 + $0x88] sm:$0xff]  ;;  %v83_v8 = vld [vmem:[#allocation5 + $0x80] sm:$0xff]  ;;  %v93_v9 = vunpack.c.h.f8e4m3fn %v67_v2 }
  0x29   :  { %v96_v10 = vunpack.c.l.f8e4m3fn %v70_v6  ;;  %v69_v11 = vld [vmem:[#allocation5 + $0x10] sm:$0xff]  ;;  %v124_v12 = vunpack.c.l.f8e4m3fn %v84_v7  ;;  %v126_v13 = vunpack.c.h.f8e4m3fn %v84_v7  ;;  %v123_v14 = vunpack.c.l.f8e4m3fn %v83_v8  ;;  %v86_v15 = vld [vmem:[#allocation5 + $0x98] sm:$0xff]  ;;  %v72_v17 = vld [vmem:[#allocation5 + $0x28] sm:$0xff] }
  0x2a   :  { %179 = vmatprep.subr.bf16.mxu1 %v92_v3  ;;  %v95_v16 = vunpack.c.l.f8e4m3fn %v69_v11  ;;  %v125_v18 = vunpack.c.h.f8e4m3fn %v83_v8  ;;  %v98_v19 = vunpack.c.h.f8e4m3fn %v70_v6  ;;  %v128_v20 = vunpack.c.l.f8e4m3fn %v86_v15  ;;  %v85_v21 = vld [vmem:[#allocation5 + $0x90] sm:$0xff]  ;;  %v71_v26 = vld [vmem:[#allocation5 + $0x20] sm:$0xff]  ;;  %v88_v28 = vld [vmem:[#allocation5 + $0xa8] sm:$0xff] }
  0x2b   :  { %180 = vmatpush1.bf16.msra.mxu1 %v91_v5  ;;  %232 = vmatprep.subr.bf16.mxu0 %v124_v12  ;;  %v404_v22 = vld [vmem:[#allocation2 + $0x4] ss:$12 sps:$4 sm:$0xff]   ;;  %v97_v23 = vunpack.c.h.f8e4m3fn %v69_v11  ;;  %v127_v24 = vunpack.c.l.f8e4m3fn %v85_v21  ;;  %v100_v25 = vunpack.c.l.f8e4m3fn %v72_v17  ;;  %v130_v27 = vunpack.c.h.f8e4m3fn %v86_v15  ;;  %v74_v34 = vld [vmem:[#allocation5 + $0x38] sm:$0xff]  ;;  %v76_v46 = vld [vmem:[#allocation5 + $0x48] sm:$0xff] }
  0x2c   :  { %181 = vmatprep.subr.bf16.mxu1 %v94_v4  ;;  %233 = vmatpush1.bf16.msra.mxu0 %v123_v14  ;;  %v99_v29 = vunpack.c.l.f8e4m3fn %v71_v26  ;;  %v129_v30 = vunpack.c.h.f8e4m3fn %v85_v21  ;;  %v102_v31 = vunpack.c.h.f8e4m3fn %v72_v17  ;;  %v132_v32 = vunpack.c.l.f8e4m3fn %v88_v28  ;;  %v87_v33 = vld [vmem:[#allocation5 + $0xa0] sm:$0xff]  ;;  %v73_v38 = vld [vmem:[#allocation5 + $0x30] sm:$0xff]  ;;  %v90_v40 = vld [vmem:[#allocation5 + $0xb8] sm:$0xff] }
  0x2d   :  { %234 = vmatprep.subr.bf16.mxu0 %v126_v13  ;;  %211 = vmatprep.mubr.bf16.mxu1 %v404_v22  ;;  %v101_v35 = vunpack.c.h.f8e4m3fn %v71_v26  ;;  %v131_v36 = vunpack.c.l.f8e4m3fn %v87_v33  ;;  %v104_v37 = vunpack.c.l.f8e4m3fn %v74_v34  ;;  %v134_v39 = vunpack.c.h.f8e4m3fn %v88_v28  ;;  %v89_v45 = vld [vmem:[#allocation5 + $0xb0] sm:$0xff]  ;;  %v75_v50 = vld [vmem:[#allocation5 + $0x40] sm:$0xff]  ;;  %v78_v55 = vld [vmem:[#allocation5 + $0x58] sm:$0xff] }
  0x2e   :  { %v103_v41 = vunpack.c.l.f8e4m3fn %v73_v38  ;;  %v133_v42 = vunpack.c.h.f8e4m3fn %v87_v33  ;;  %v106_v43 = vunpack.c.h.f8e4m3fn %v74_v34  ;;  %v136_v44 = vunpack.c.l.f8e4m3fn %v90_v40  ;;  %v401_v56 = vld [vmem:[#allocation2 + $0x8] ss:$12 sps:$4 sm:$0xff]   ;;  %v77_v59 = vld [vmem:[#allocation5 + $0x50] sm:$0xff]  ;;  %v80_v62 = vld [vmem:[#allocation5 + $0x68] sm:$0xff] }
  0x2f   :  { %182 = vmatpush1.bf16.msra.mxu1 %v93_v9  ;;  %v105_v47 = vunpack.c.h.f8e4m3fn %v73_v38  ;;  %v135_v48 = vunpack.c.l.f8e4m3fn %v89_v45  ;;  %v108_v49 = vunpack.c.l.f8e4m3fn %v76_v46  ;;  %v138_v51 = vunpack.c.h.f8e4m3fn %v90_v40  ;;  %v405_v63 = vld [vmem:[#allocation2 + $0x20] ss:$12 sps:$4 sm:$0xff]   ;;  %v79_v3 = vld [vmem:[#allocation5 + $0x60] sm:$0xff]  ;;  %v406_v13 = vld [vmem:[#allocation2 + $0x1c] ss:$12 sps:$4 sm:$0xff]  }
  0x30   :  { %183 = vmatprep.subr.bf16.mxu1 %v96_v10  ;;  %235 = vmatpush1.bf16.msra.mxu0 %v125_v18  ;;  %v107_v52 = vunpack.c.l.f8e4m3fn %v75_v50  ;;  %v137_v53 = vunpack.c.h.f8e4m3fn %v89_v45  ;;  %v110_v54 = vunpack.c.h.f8e4m3fn %v76_v46  ;;  %v109_v57 = vunpack.c.h.f8e4m3fn %v75_v50  ;;  %v82_v6 = vld [vmem:[#allocation5 + $0x78] sm:$0xff]  ;;  %v408_v14 = vld [vmem:[#allocation2 + $0x18] ss:$12 sps:$4 sm:$0xff]   ;;  %v312_v26 = vld [vmem:[%s566_s2] sm:$0x3]  ;;  %s488_s2 = smov [#allocation7]  }
  0x31   :  { %236 = vmatprep.subr.bf16.mxu0 %v128_v20  ;;  %v112_v58 = vunpack.c.l.f8e4m3fn %v78_v55  ;;  %v111_v60 = vunpack.c.l.f8e4m3fn %v77_v59  ;;  %v114_v61 = vunpack.c.h.f8e4m3fn %v78_v55  ;;  %v113_v1 = vunpack.c.h.f8e4m3fn %v77_v59  ;;  %v402_v12 = vld [vmem:[#allocation2] ss:$12 sps:$4 sm:$0xff]  }
  0x32   :  { %v116_v2 = vunpack.c.l.f8e4m3fn %v80_v62  ;;  %v115_v4 = vunpack.c.l.f8e4m3fn %v79_v3  ;;  %v118_v5 = vunpack.c.h.f8e4m3fn %v80_v62  ;;  %v117_v7 = vunpack.c.h.f8e4m3fn %v79_v3 }
  0x33   :  { %184 = vmatpush1.bf16.msra.mxu1 %v95_v16  ;;  %v120_v8 = vunpack.c.l.f8e4m3fn %v82_v6  ;;  %v122_v10 = vunpack.c.h.f8e4m3fn %v82_v6 }
  0x34   :  { %185 = vmatprep.subr.bf16.mxu1 %v98_v19  ;;  %237 = vmatpush1.bf16.msra.mxu0 %v127_v24 }
  0x35   :  { %238 = vmatprep.subr.bf16.mxu0 %v130_v27 }
  0x37   :  { %186 = vmatpush1.bf16.msra.mxu1 %v97_v23  ;;  %v314_v23 = vlaneseq }
  0x38   :  { %187 = vmatprep.subr.bf16.mxu1 %v100_v25  ;;  %239 = vmatpush1.bf16.msra.mxu0 %v129_v30 }
  0x39   :  { %240 = vmatprep.subr.bf16.mxu0 %v132_v32  ;;  %v315_v24 = vshrl.u32 %v314_v23, 7 }
  0x3b   :  { %188 = vmatpush1.bf16.msra.mxu1 %v99_v29  ;;  %v316_v25 = vsub.s32 0, %v315_v24  ;;  %v320_v27 = vsub.s32 1, %v315_v24  ;;  %v332_v29 = vld [vmem:[%s567_s3] sm:$0x3]  ;;  %s365_s3 = sshll.u32 %s488_s2, 4  ;;  %s366_s3 = int_to_ptr.vmem [resolvable:$true] %s365_s3 }
  0x3c   :  { %189 = vmatprep.subr.bf16.mxu1 %v102_v31  ;;  %241 = vmatpush1.bf16.msra.mxu0 %v131_v36  ;;  %s453_s19 = scalar_lea.vmem %s366_s3, 1024  ;;  %p458_p3 = scmp.lt.s32.totalorder %s366_s3, %s366_s3 }
  0x3d   :  { %242 = vmatprep.subr.bf16.mxu0 %v134_v39  ;;  %v317_v31 = vrot.slane %v312_v26, %v316_v25  ;;  %v321_v34 = vrot.slane %v312_v26, %v320_v27  ;;  %v337_v36 = vrot.slane %v332_v29, %v316_v25  ;;  %v341_v39 = vrot.slane %v332_v29, %v320_v27  ;;  %p454_p2 = scmp.ne.s32.totalorder %s366_s3, %s453_s19  ;;  %p459_p4 = scmp.lt.s32.totalorder %s453_s19, %s453_s19 }
  0x3f   :  { %190 = vmatpush1.bf16.msra.mxu1 %v101_v35  ;;  %p460_p5 = por %p459_p4, %p458_p3 }
  0x40   :  { %191 = vmatprep.subr.bf16.mxu1 %v104_v37  ;;  %243 = vmatpush1.bf16.msra.mxu0 %v133_v42 }
  0x41   :  { %244 = vmatprep.subr.bf16.mxu0 %v136_v44  ;;  %p461_p6 = pnand %p460_p5, %p454_p2 }
  0x43   :  { %192 = vmatpush1.bf16.msra.mxu1 %v103_v41 }
  0x44   :  { %193 = vmatprep.subr.bf16.mxu1 %v106_v43  ;;  %245 = vmatpush1.bf16.msra.mxu0 %v135_v48 }
  0x45   :  { %246 = vmatprep.subr.bf16.mxu0 %v138_v51 }
  0x47   :  { %194 = vmatpush1.bf16.msra.mxu1 %v105_v47 }
  0x48   :  { %195 = vmatprep.subr.bf16.mxu1 %v108_v49  ;;  %247 = vmatpush1.bf16.msra.mxu0 %v137_v53 }
  0x4b   :  { %196 = vmatpush1.bf16.msra.mxu1 %v107_v52  ;;  %265 = vmatmul.mubr.bf16.vlgmr.msra.gmra.mrb[0].mxu0 %v401_v56 }
  0x4c   :  { %197 = vmatprep.subr.bf16.mxu1 %v110_v54  ;;  %274 = vmatprep.mubr.bf16.mxu0 %v487_v0  ;;  %v81_v0 = vld [vmem:[#allocation5 + $0x70] sm:$0xff] }
  0x4d   :  { %v119_v9 = vunpack.c.l.f8e4m3fn %v81_v0  ;;  %v121_v11 = vunpack.c.h.f8e4m3fn %v81_v0 }
  0x4f   :  { %198 = vmatpush1.bf16.msra.mxu1 %v109_v57 }
  0x50   :  { %199 = vmatprep.subr.bf16.mxu1 %v112_v58 }
  0x53   :  { %200 = vmatpush1.bf16.msra.mxu1 %v111_v60  ;;  %275 = vmatmul.mubr.bf16.gmra.mrb[4].mxu0 %v405_v63 }
  0x54   :  { %201 = vmatprep.subr.bf16.mxu1 %v114_v61 }
  0x57   :  { %202 = vmatpush1.bf16.msra.mxu1 %v113_v1 }
  0x58   :  { %203 = vmatprep.subr.bf16.mxu1 %v116_v2 }
  0x5b   :  { %204 = vmatpush1.bf16.msra.mxu1 %v115_v4 }
  0x5c   :  { %205 = vmatprep.subr.bf16.mxu1 %v118_v5 }
  0x5f   :  { %206 = vmatpush1.bf16.msra.mxu1 %v117_v7 }
  0x60   :  { %207 = vmatprep.subr.bf16.mxu1 %v120_v8 }
  0x63   :  { %208 = vmatpush1.bf16.msra.mxu1 %v119_v9 }
  0x64   :  { %209 = vmatprep.subr.bf16.mxu1 %v122_v10 }
  0x67   :  { %210 = vmatpush1.bf16.msra.mxu1 %v121_v11 }
  0x6a   :  { %212 = vmatmul.mubr.bf16.vlgmr.msra.gmra.mrb[0].mxu1 %v402_v12 }
  0x6b   :  { %221 = vmatprep.mubr.bf16.mxu1 %v406_v13 }
  0x72   :  { %222 = vmatmul.mubr.bf16.gmra.mrb[4].mxu1 %v408_v14 }
 0x11e   :  { %v266_v15 = vpop.f32.mrb[0].mxu0 }
 0x11f   :  { %v268_v16 = vpop.f32.mrb[1].mxu0 }
 0x120   :  { %v270_v17 = vpop.f32.mrb[2].mxu0 }
 0x121   :  { %v272_v18 = vpop.f32.mrb[3].mxu0 }
 0x126   :  { %v276_v19 = vpop.f32.mrb[4].mxu0 }
 0x127   :  { %v278_v20 = vpop.f32.mrb[5].mxu0 }
 0x128   :  { %v280_v21 = vpop.f32.mrb[6].mxu0 }
 0x129   :  { %v282_v22 = vpop.f32.mrb[7].mxu0 }
 0x13d   :  { %v213_v28 = vpop.f32.mrb[0].mxu1 }
 0x13e   :  { %v267_v30 = vadd.f32 %v266_v15, %v213_v28  ;;  %v215_v32 = vpop.f32.mrb[1].mxu1 }
 0x13f   :  { %v269_v33 = vadd.f32 %v268_v16, %v215_v32  ;;  %v217_v35 = vpop.f32.mrb[2].mxu1 }
 0x140   :  { %v271_v37 = vadd.f32 %v270_v17, %v217_v35  ;;  %v219_v38 = vpop.f32.mrb[3].mxu1  ;;  %v324_v41 = vmul.f32 %v317_v31, %v267_v30 }
 0x141   :  { %v273_v40 = vadd.f32 %v272_v18, %v219_v38  ;;  %v325_v42 = vmul.f32 %v321_v34, %v269_v33 }
 0x142   :  { %v344_v43 = vadd.f32 %v337_v36, %v324_v41  ;;  %v326_v44 = vmul.f32 %v317_v31, %v271_v37 }
 0x143   :  { %v345_v45 = vadd.f32 %v341_v39, %v325_v42  ;;  %v327_v46 = vmul.f32 %v321_v34, %v273_v40 }
 0x144   :  { %352 = vst [vmem:[#allocation7] sm:$0xff] %v344_v43  ;;  %v346_v48 = vadd.f32 %v337_v36, %v326_v44 }
 0x145   :  { %v223_v47 = vpop.f32.mrb[4].mxu1  ;;  %353 = vst [vmem:[#allocation7 + $0x8] sm:$0xff] %v345_v45  ;;  %v347_v51 = vadd.f32 %v341_v39, %v327_v46 }
 0x146   :  { %v277_v49 = vadd.f32 %v276_v19, %v223_v47  ;;  %v225_v50 = vpop.f32.mrb[5].mxu1  ;;  %354 = vst [vmem:[#allocation7 + $0x10] sm:$0xff] %v346_v48 }
 0x147   :  { %v279_v52 = vadd.f32 %v278_v20, %v225_v50  ;;  %v227_v53 = vpop.f32.mrb[6].mxu1  ;;  %355 = vst [vmem:[#allocation7 + $0x18] sm:$0xff] %v347_v51 }
 0x148   :  { %v281_v54 = vadd.f32 %v280_v21, %v227_v53  ;;  %v229_v55 = vpop.f32.mrb[7].mxu1  ;;  %v328_v57 = vmul.f32 %v317_v31, %v277_v49 }
 0x149   :  { %v283_v56 = vadd.f32 %v282_v22, %v229_v55  ;;  %v329_v58 = vmul.f32 %v321_v34, %v279_v52 }
 0x14a   :  { %v348_v59 = vadd.f32 %v337_v36, %v328_v57  ;;  %v330_v60 = vmul.f32 %v317_v31, %v281_v54 }
 0x14b   :  { %v349_v61 = vadd.f32 %v341_v39, %v329_v58  ;;  %v331_v62 = vmul.f32 %v321_v34, %v283_v56 }
 0x14c   :  { %356 = vst [vmem:[#allocation7 + $0x20] sm:$0xff] %v348_v59  ;;  %v350_v63 = vadd.f32 %v337_v36, %v330_v60 }
 0x14d   :  { %357 = vst [vmem:[#allocation7 + $0x28] sm:$0xff] %v349_v61  ;;  %v351_v1 = vadd.f32 %v341_v39, %v331_v62 }
 0x14e   :  { %358 = vst [vmem:[#allocation7 + $0x30] sm:$0xff] %v350_v63 }
 0x14f   :  { %359 = vst [vmem:[#allocation7 + $0x38] sm:$0xff] %v351_v1 }
 0x150   :  { %464 = shalt.err (!%p461_p6)
}
 0x151   :  { %s465_s22 = scalar_lea.hbm %s568_s4, 1024 }
 0x152   :  { %p466_p7 = scmp.ne.s32.totalorder %s568_s4, %s465_s22  ;;  %p469_p8 = scmp.lt.u32.totalorder %s465_s22, %s568_s4 }
 0x154   :  { %p471_p9 = pnand %p469_p8, %p466_p7 }
 0x156   :  { %474 = shalt.err (!%p471_p9)
}
 0x157   :  { %371 = dma.vmem_to_hbm [thread:$0]  %s366_s3, 1024, %s568_s4, [#allocation4], %s485_s0, %s485_s0, %s486_s13  }
 0x158   :  { %479 = dma.done.wait [#allocation4], 1024  }
 0x159   :  { %480 = vsyncadd [#allocation4], 4294966272 }
 0x15a   :  { %375 = vsyncpa [#allocation3], 1 }
 0x15b   :  { %376 = vsyncpa [#allocation6], 1 }
 0x15c   :  { %377 = vsyncpa [#allocation4], 1 }

</bundles_post_ra>
